<compile_context>
chip_gen: v7x
topology: tpu7x:2x2x1
jax: 0.10.0
libtpu: 0.0.40
codegen_flags: <defaults>
</compile_context>

<pallas_src>
import numpy as np
import jax
import jax.numpy as jnp
from jax.experimental import pallas as pl
from jax.experimental.pallas import tpu as pltpu

# ----- configuration (mirrors cross_ltv.__init__ at small sizes) -----
NUM_TASKS = 20
NUM_EXPERTS = 4
CAT_FEAT_SIZES = (16, 32)                                    # categorical vocab sizes
EMB_DIMS = tuple(int(np.log2(s)) for s in CAT_FEAT_SIZES)    # (4, 5)
NUM_FEAT_SIZE = 4
NUMERIC_DIM = 10 * NUM_FEAT_SIZE                             # 40
TOTAL_EMB = sum(d * NUM_TASKS for d in EMB_DIMS)             # 180
INPUT_SIZE = TOTAL_EMB + NUMERIC_DIM                         # 220
EXPERT_UNITS = INPUT_SIZE // 2                               # 110
BATCH = 8

U_PAD = 128                   # expert width 110 -> 128 (lane aligned)
G_PAD = 128                   # per-expert gate/task-head block 60 -> 128
EW = NUM_EXPERTS * U_PAD      # 512 expert columns
GW = NUM_EXPERTS * G_PAD      # 512 gate columns
GT = NUM_TASKS * 3            # 60 real output columns


# --------------------------------------------------------------------------
# Single fused kernel: (folded numeric) + experts + gates + task heads + mix.
# --------------------------------------------------------------------------
def _cross_ltv_kernel(xcat_ref, xnum_ref,
                      wcat_ref, wnum_ref, bias_ref,
                      wtask_ref, btask_ref,
                      out_ref):
    # one fused matmul pair produces experts AND gate logits: [B, EW+GW]
    y = (jnp.dot(xcat_ref[...], wcat_ref[...], preferred_element_type=jnp.float32)
         + jnp.dot(xnum_ref[...], wnum_ref[...], preferred_element_type=jnp.float32)
         + bias_ref[...])

    # experts: ReLU (+ eval-mode Dropout = identity; extra F.relu idempotent)
    h = jnp.maximum(y[:, :EW], 0.0)                       # [B, 512]
    # gate logits, expert-major, each task-expert logit duplicated x3
    logits = y[:, EW:]                                    # [B, 512]

    wt = wtask_ref[...]                                   # shared [128, 128] head

    # softmax over experts = elementwise ops across the 4 width-G_PAD column
    # groups (lane-aligned slices, no cross-lane reductions).
    m = logits[:, 0:G_PAD]
    for e in range(1, NUM_EXPERTS):
        m = jnp.maximum(m, logits[:, e * G_PAD:(e + 1) * G_PAD])

    acc = None
    s = None
    for e in range(NUM_EXPERTS):
        p = jnp.exp(logits[:, e * G_PAD:(e + 1) * G_PAD] - m)
        ze = jnp.dot(h[:, e * U_PAD:(e + 1) * U_PAD], wt,
                     preferred_element_type=jnp.float32)  # [B, 128]
        acc = p * ze if acc is None else acc + p * ze
        s = p if s is None else s + p

    # lane-dense [B, 128] store; columns >= 60 are zero by construction
    out_ref[...] = acc / s + btask_ref[...]


# --------------------------------------------------------------------------
# Weight packing (done once, outside the kernel)
# --------------------------------------------------------------------------
def pack_params(params):
    D, E, U, T = INPUT_SIZE, NUM_EXPERTS, EXPERT_UNITS, NUM_TASKS

    # experts -> [D, E*U_PAD]
    we = jnp.transpose(params["w_exp"], (1, 0, 2))                    # [D, E, U]
    we = jnp.pad(we, ((0, 0), (0, 0), (0, U_PAD - U))).reshape(D, EW)
    be = jnp.pad(params["b_exp"], ((0, 0), (0, U_PAD - U))).reshape(1, EW)

    # gates -> [D, E*G_PAD]; column (e*G_PAD + t*3 + k) = w_gate[t, :, e]
    wg = jnp.transpose(params["w_gate"], (2, 0, 1))                   # [E, T, D]
    wg = jnp.repeat(wg[:, :, None, :], 3, axis=2).reshape(E, T * 3, D)
    wg = jnp.pad(wg, ((0, 0), (0, G_PAD - T * 3), (0, 0)))            # [E, G_PAD, D]
    wg = jnp.transpose(wg.reshape(GW, D))                             # [D, E*G_PAD]
    bg = jnp.repeat(params["b_gate"].T[:, :, None], 3, axis=2).reshape(E, T * 3)
    bg = jnp.pad(bg, ((0, 0), (0, G_PAD - T * 3))).reshape(1, GW)

    # fused expert+gate weight / bias, then fold the numeric Linear through
    # the numeric-feature rows (x_num @ Wn @ W == x_num @ (Wn @ W)).
    W = jnp.concatenate([we, wg], axis=1)                             # [220, 1024]
    b = jnp.concatenate([be, bg], axis=1)                             # [1, 1024]
    w_cat = W[:TOTAL_EMB]                                             # [180, 1024]
    w_num_rows = W[TOTAL_EMB:]                                        # [40, 1024]
    w_num = params["w_num"] @ w_num_rows                              # [4, 1024]
    bias = b + params["b_num"].reshape(1, NUMERIC_DIM) @ w_num_rows   # [1, 1024]

    # shared task-head weight -> [U_PAD, G_PAD]; column t*3+k = w_task[t, :, k]
    wt = jnp.transpose(params["w_task"], (1, 0, 2)).reshape(U, T * 3)
    wt = jnp.pad(wt, ((0, U_PAD - U), (0, G_PAD - T * 3)))            # [128, 128]
    bt = jnp.pad(params["b_task"].reshape(1, T * 3),
                 ((0, 0), (0, G_PAD - T * 3)))                        # [1, 128]

    return dict(w_cat=w_cat, w_num=w_num, bias=bias, w_task=wt, b_task=bt)


# --------------------------------------------------------------------------
# Full forward (embedding gathers stay in plain JAX; one pallas_call total)
# --------------------------------------------------------------------------
# TODO(synk): embedding-table gathers are data-dependent row lookups; they are
# left to XLA outside the kernel rather than emulated with per-row DMAs.
@jax.jit
def _forward_jit(packed, emb_tables, x_cat_list, x_num):
    B = x_num.shape[0]
    emb_parts = [emb_tables[i][x_cat_list[i]].reshape(B, -1)
                 for i in range(len(x_cat_list))]
    x_cat_emb = jnp.concatenate(emb_parts, axis=1)          # [B, 180]

    vmem = pl.BlockSpec(memory_space=pltpu.MemorySpace.VMEM)
    out = pl.pallas_call(
        _cross_ltv_kernel,
        out_shape=jax.ShapeDtypeStruct((B, G_PAD), jnp.float32),
        in_specs=[vmem] * 7,
        out_specs=vmem,
    )(x_cat_emb, x_num,
      packed["w_cat"], packed["w_num"], packed["bias"],
      packed["w_task"], packed["b_task"])

    out3 = out[:, :GT].reshape(B, NUM_TASKS, 3)
    return [out3[:, t, :] for t in range(NUM_TASKS)]        # list of [B, 3]


def cross_ltv_forward(params, x_cat_list, x_num, packed=None):
    if packed is None:
        packed = pack_params(params)
    return _forward_jit(packed, params["emb_tables"], x_cat_list, x_num)


# --------------------------------------------------------------------------
# Pure-JAX reference (direct translation of the PyTorch forward, eval mode)
# --------------------------------------------------------------------------
def reference_forward(params, x_cat_list, x_num):
    emb_parts = [t[c].reshape(c.shape[0], -1)
                 for t, c in zip(params["emb_tables"], x_cat_list)]
    x_cat_emb = jnp.concatenate(emb_parts, axis=1)
    x_num_out = x_num @ params["w_num"] + params["b_num"]
    x = jnp.concatenate([x_cat_emb, x_num_out], axis=1)
    experts = [jnp.maximum(x @ params["w_exp"][e] + params["b_exp"][e], 0.0)
               for e in range(NUM_EXPERTS)]
    outs = []
    for t in range(NUM_TASKS):
        g = jax.nn.softmax(x @ params["w_gate"][t] + params["b_gate"][t], axis=1)
        mix = sum(g[:, e:e + 1] * experts[e] for e in range(NUM_EXPERTS))
        outs.append(mix @ params["w_task"][t] + params["b_task"][t])
    return outs


# --------------------------------------------------------------------------
def init_params(key):
    ks = jax.random.split(key, 10)
    emb_tables = [
        jax.random.normal(ks[i], (size, dim), jnp.float32) * 0.1
        for i, (size, dim) in enumerate(zip(CAT_FEAT_SIZES, EMB_DIMS))
    ]
    params = {
        "emb_tables": emb_tables,
        "w_num": jax.random.normal(ks[2], (NUM_FEAT_SIZE, NUMERIC_DIM)) * 0.1,
        "b_num": jax.random.normal(ks[3], (NUMERIC_DIM,)) * 0.1,
        "w_exp": jax.random.normal(ks[4], (NUM_EXPERTS, INPUT_SIZE, EXPERT_UNITS)) * 0.05,
        "b_exp": jax.random.normal(ks[5], (NUM_EXPERTS, EXPERT_UNITS)) * 0.05,
        "w_gate": jax.random.normal(ks[6], (NUM_TASKS, INPUT_SIZE, NUM_EXPERTS)) * 0.05,
        "b_gate": jax.random.normal(ks[7], (NUM_TASKS, NUM_EXPERTS)) * 0.05,
        "w_task": jax.random.normal(ks[8], (NUM_TASKS, EXPERT_UNITS, 3)) * 0.05,
        "b_task": jax.random.normal(ks[9], (NUM_TASKS, 3)) * 0.05,
    }
    return jax.tree_util.tree_map(lambda a: a.astype(jnp.float32), params)


if __name__ == "__main__":
    key = jax.random.PRNGKey(0)
    pkey, k_cat0, k_cat1, k_num = jax.random.split(key, 4)
    params = init_params(pkey)
    packed = pack_params(params)

    # each categorical input has one column per task (20 columns)
    x_cat_list = [
        jax.random.randint(k_cat0, (BATCH, NUM_TASKS), 0, CAT_FEAT_SIZES[0], jnp.int32),
        jax.random.randint(k_cat1, (BATCH, NUM_TASKS), 0, CAT_FEAT_SIZES[1], jnp.int32),
    ]
    x_num = jax.random.normal(k_num, (BATCH, NUM_FEAT_SIZE), jnp.float32)

    outs = cross_ltv_forward(params, x_cat_list, x_num, packed=packed)
    outs = jax.block_until_ready(outs)

    refs = reference_forward(params, x_cat_list, x_num)
    for o, r in zip(outs, refs):
        assert o.shape == (BATCH, 3)
        np.testing.assert_allclose(np.asarray(o), np.asarray(r),
                                   rtol=1e-4, atol=1e-4)

    print("KERNEL_OK")
</pallas_src>

<mosaic_0001>
module attributes {stable_mosaic.version = 11 : i64} {
  func.func @_cross_ltv_kernel(%arg0: memref<8x180xf32, #tpu.memory_space<vmem>>, %arg1: memref<8x4xf32, #tpu.memory_space<vmem>>, %arg2: memref<180x1024xf32, #tpu.memory_space<vmem>>, %arg3: memref<4x1024xf32, #tpu.memory_space<vmem>>, %arg4: memref<1x1024xf32, #tpu.memory_space<vmem>>, %arg5: memref<128x128xf32, #tpu.memory_space<vmem>>, %arg6: memref<1x128xf32, #tpu.memory_space<vmem>>, %arg7: memref<8x128xf32, #tpu.memory_space<vmem>>) attributes {dimension_semantics = [], scalar_prefetch = 0 : i64, scratch_operands = 0 : i64, tpu.core_type = #tpu.core_type<tc>} {
    %c0 = arith.constant 0 : index
    %c0_0 = arith.constant 0 : index
    %0 = vector.load %arg0[%c0, %c0_0] : memref<8x180xf32, #tpu.memory_space<vmem>>, vector<8x180xf32>
    %c0_1 = arith.constant 0 : index
    %c0_2 = arith.constant 0 : index
    %1 = vector.load %arg2[%c0_1, %c0_2] : memref<180x1024xf32, #tpu.memory_space<vmem>>, vector<180x1024xf32>
    %cst = arith.constant dense<0.000000e+00> : vector<8x1024xf32>
    %2 = tpu.matmul %0, %1, %cst {dimension_numbers = #tpu.dot_dimension_numbers<[1], [0], [0], [1], [0, 0, 1, 1], [], []>} : vector<8x180xf32>, vector<180x1024xf32>, vector<8x1024xf32> -> vector<8x1024xf32>
    %c0_3 = arith.constant 0 : index
    %c0_4 = arith.constant 0 : index
    %3 = vector.load %arg1[%c0_3, %c0_4] : memref<8x4xf32, #tpu.memory_space<vmem>>, vector<8x4xf32>
    %c0_5 = arith.constant 0 : index
    %c0_6 = arith.constant 0 : index
    %4 = vector.load %arg3[%c0_5, %c0_6] : memref<4x1024xf32, #tpu.memory_space<vmem>>, vector<4x1024xf32>
    %cst_7 = arith.constant dense<0.000000e+00> : vector<8x1024xf32>
    %5 = tpu.matmul %3, %4, %cst_7 {dimension_numbers = #tpu.dot_dimension_numbers<[1], [0], [0], [1], [0, 0, 1, 1], [], []>} : vector<8x4xf32>, vector<4x1024xf32>, vector<8x1024xf32> -> vector<8x1024xf32>
    %6 = arith.addf %2, %5 : vector<8x1024xf32>
    %c0_8 = arith.constant 0 : index
    %c0_9 = arith.constant 0 : index
    %7 = vector.load %arg4[%c0_8, %c0_9] : memref<1x1024xf32, #tpu.memory_space<vmem>>, vector<1x1024xf32>
    %8 = vector.broadcast %7 : vector<1x1024xf32> to vector<8x1024xf32>
    %9 = arith.addf %6, %8 : vector<8x1024xf32>
    %10 = vector.extract_strided_slice %9 {offsets = [0, 0], sizes = [8, 512], strides = [1, 1]} : vector<8x1024xf32> to vector<8x512xf32>
    %cst_10 = arith.constant 0.000000e+00 : f32
    %11 = vector.broadcast %cst_10 : f32 to vector<8x512xf32>
    %12 = arith.maximumf %10, %11 : vector<8x512xf32>
    %13 = vector.extract_strided_slice %9 {offsets = [0, 512], sizes = [8, 512], strides = [1, 1]} : vector<8x1024xf32> to vector<8x512xf32>
    %c0_11 = arith.constant 0 : index
    %c0_12 = arith.constant 0 : index
    %14 = vector.load %arg5[%c0_11, %c0_12] : memref<128x128xf32, #tpu.memory_space<vmem>>, vector<128x128xf32>
    %15 = vector.extract_strided_slice %13 {offsets = [0, 0], sizes = [8, 128], strides = [1, 1]} : vector<8x512xf32> to vector<8x128xf32>
    %16 = vector.extract_strided_slice %13 {offsets = [0, 128], sizes = [8, 128], strides = [1, 1]} : vector<8x512xf32> to vector<8x128xf32>
    %17 = arith.maximumf %15, %16 : vector<8x128xf32>
    %18 = vector.extract_strided_slice %13 {offsets = [0, 256], sizes = [8, 128], strides = [1, 1]} : vector<8x512xf32> to vector<8x128xf32>
    %19 = arith.maximumf %17, %18 : vector<8x128xf32>
    %20 = vector.extract_strided_slice %13 {offsets = [0, 384], sizes = [8, 128], strides = [1, 1]} : vector<8x512xf32> to vector<8x128xf32>
    %21 = arith.maximumf %19, %20 : vector<8x128xf32>
    %22 = vector.extract_strided_slice %13 {offsets = [0, 0], sizes = [8, 128], strides = [1, 1]} : vector<8x512xf32> to vector<8x128xf32>
    %23 = arith.subf %22, %21 : vector<8x128xf32>
    %24 = math.exp %23 : vector<8x128xf32>
    %25 = vector.extract_strided_slice %12 {offsets = [0, 0], sizes = [8, 128], strides = [1, 1]} : vector<8x512xf32> to vector<8x128xf32>
    %cst_13 = arith.constant dense<0.000000e+00> : vector<8x128xf32>
    %26 = tpu.matmul %25, %14, %cst_13 {dimension_numbers = #tpu.dot_dimension_numbers<[1], [0], [0], [1], [0, 0, 1, 1], [], []>} : vector<8x128xf32>, vector<128x128xf32>, vector<8x128xf32> -> vector<8x128xf32>
    %27 = arith.mulf %24, %26 : vector<8x128xf32>
    %28 = vector.extract_strided_slice %13 {offsets = [0, 128], sizes = [8, 128], strides = [1, 1]} : vector<8x512xf32> to vector<8x128xf32>
    %29 = arith.subf %28, %21 : vector<8x128xf32>
    %30 = math.exp %29 : vector<8x128xf32>
    %31 = vector.extract_strided_slice %12 {offsets = [0, 128], sizes = [8, 128], strides = [1, 1]} : vector<8x512xf32> to vector<8x128xf32>
    %cst_14 = arith.constant dense<0.000000e+00> : vector<8x128xf32>
    %32 = tpu.matmul %31, %14, %cst_14 {dimension_numbers = #tpu.dot_dimension_numbers<[1], [0], [0], [1], [0, 0, 1, 1], [], []>} : vector<8x128xf32>, vector<128x128xf32>, vector<8x128xf32> -> vector<8x128xf32>
    %33 = arith.mulf %30, %32 : vector<8x128xf32>
    %34 = arith.addf %27, %33 : vector<8x128xf32>
    %35 = arith.addf %24, %30 : vector<8x128xf32>
    %36 = vector.extract_strided_slice %13 {offsets = [0, 256], sizes = [8, 128], strides = [1, 1]} : vector<8x512xf32> to vector<8x128xf32>
    %37 = arith.subf %36, %21 : vector<8x128xf32>
    %38 = math.exp %37 : vector<8x128xf32>
    %39 = vector.extract_strided_slice %12 {offsets = [0, 256], sizes = [8, 128], strides = [1, 1]} : vector<8x512xf32> to vector<8x128xf32>
    %cst_15 = arith.constant dense<0.000000e+00> : vector<8x128xf32>
    %40 = tpu.matmul %39, %14, %cst_15 {dimension_numbers = #tpu.dot_dimension_numbers<[1], [0], [0], [1], [0, 0, 1, 1], [], []>} : vector<8x128xf32>, vector<128x128xf32>, vector<8x128xf32> -> vector<8x128xf32>
    %41 = arith.mulf %38, %40 : vector<8x128xf32>
    %42 = arith.addf %34, %41 : vector<8x128xf32>
    %43 = arith.addf %35, %38 : vector<8x128xf32>
    %44 = vector.extract_strided_slice %13 {offsets = [0, 384], sizes = [8, 128], strides = [1, 1]} : vector<8x512xf32> to vector<8x128xf32>
    %45 = arith.subf %44, %21 : vector<8x128xf32>
    %46 = math.exp %45 : vector<8x128xf32>
    %47 = vector.extract_strided_slice %12 {offsets = [0, 384], sizes = [8, 128], strides = [1, 1]} : vector<8x512xf32> to vector<8x128xf32>
    %cst_16 = arith.constant dense<0.000000e+00> : vector<8x128xf32>
    %48 = tpu.matmul %47, %14, %cst_16 {dimension_numbers = #tpu.dot_dimension_numbers<[1], [0], [0], [1], [0, 0, 1, 1], [], []>} : vector<8x128xf32>, vector<128x128xf32>, vector<8x128xf32> -> vector<8x128xf32>
    %49 = arith.mulf %46, %48 : vector<8x128xf32>
    %50 = arith.addf %42, %49 : vector<8x128xf32>
    %51 = arith.addf %43, %46 : vector<8x128xf32>
    %52 = arith.divf %50, %51 : vector<8x128xf32>
    %c0_17 = arith.constant 0 : index
    %c0_18 = arith.constant 0 : index
    %53 = vector.load %arg6[%c0_17, %c0_18] : memref<1x128xf32, #tpu.memory_space<vmem>>, vector<1x128xf32>
    %54 = vector.broadcast %53 : vector<1x128xf32> to vector<8x128xf32>
    %55 = arith.addf %52, %54 : vector<8x128xf32>
    %c0_19 = arith.constant 0 : index
    %c0_20 = arith.constant 0 : index
    %56 = vector.load %arg7[%c0_19, %c0_20] : memref<8x128xf32, #tpu.memory_space<vmem>>, vector<8x128xf32>
    tpu.vector_store %arg7[%c0_19, %c0_20], %55 {strides = array<i32>} : memref<8x128xf32, #tpu.memory_space<vmem>>, vector<8x128xf32>,
    return
  }
}

</mosaic_0001>

<bundles_post_ra>
// kernel: _forward_jit.1
= control target key start
LH: loop header
LB: loop body
LE: loop exit
PB: predicated region body
PF: predicated region fallthrough
CT: control target
= control target key end

     0   :  { %vm229_vm0 = vcmask 1043456   ;;  %v1762_v2 = vmov 0.0   ;;  %vm225_vm1 = vcmask 31744   ;;  %vm530_vm2 = vcmask 424960   ;;  %s2569_s3 = inlined_call_operand.vmem [shape: f32[4,1024], index: 3, kind: input, shape index: {}]   ;;  %s2570_s1 = inlined_call_operand.vmem [shape: f32[8,4], index: 1, kind: input, shape index: {}]   ;;  %s2571_s2 = inlined_call_operand.vmem [shape: f32[180,1024], index: 2, kind: input, shape index: {}]   ;;  %s2572_s0 = inlined_call_operand.vmem [shape: f32[8,180], index: 0, kind: input, shape index: {}]   ;;  %s2573_s5 = inlined_call_operand.vmem [shape: f32[128,128], index: 5, kind: input, shape index: {}]   ;;  %s2574_s4 = inlined_call_operand.vmem [shape: f32[1,1024], index: 4, kind: input, shape index: {}]   ;;  %s2575_s6 = inlined_call_operand.vmem [shape: f32[1,128], index: 6, kind: input, shape index: {}]   ;;  %s2576_s7 = inlined_call_operand.vmem [shape: f32[8,128], index: 7, kind: output, shape index: {}]  }
   0x1   :  { %v213_v0 = vld [vmem:[%s2569_s3] sm:$0xff]  ;;  %v214_v1 = vld [vmem:[%s2569_s3 + $0x8] sm:$0xff]  ;;  %310 = vmatprep.mubr.f32.mxu0 %v1762_v2  ;;  %381 = vmatprep.mubr.f32.mxu1 %v1762_v2  ;;  %v215_v6 = vld [vmem:[%s2569_s3 + $0x10] sm:$0xff]  ;;  %vm1764_vm3 = vmmov 0  }
   0x2   :  { %v212_v3 = vld [vmem:[%s2570_s1] sm:$0xff]  ;;  %v221_v4 = vcombine.high %v213_v0, %v213_v0  ;;  %v222_v5 = vcombine.high %v214_v1, %v214_v1  ;;  %v216_v7 = vld [vmem:[%s2569_s3 + $0x18] sm:$0xff]  ;;  %v29_v8 = vld [vmem:[%s2571_s2 + $0x8] sm:$0xff]  ;;  %v223_v9 = vcombine.high %v215_v6, %v215_v6 }
   0x3   :  { %v224_v10 = vcombine.high %v216_v7, %v216_v7  ;;  %v37_v11 = vld [vmem:[%s2571_s2 + $0x48] sm:$0xff]  ;;  %v31_v12 = vld [vmem:[%s2571_s2 + $0x18] sm:$0xff]  ;;  %v28_v14 = vld [vmem:[%s2571_s2] sm:$0xff] }
   0x4   :  { %v39_v13 = vld [vmem:[%s2571_s2 + $0x58] sm:$0xff]  ;;  %1232 = vmatprep.subr.msk.mxu0 %vm229_vm0, %v221_v4  ;;  %1235 = vmatprep.subr.msk.mxu1 %vm229_vm0, %v222_v5  ;;  %v36_v15 = vld [vmem:[%s2571_s2 + $0x40] sm:$0xff]  ;;  %v30_v16 = vld [vmem:[%s2571_s2 + $0x10] sm:$0xff]  ;;  %v1465_v19 = vpack.c.bf16 %v37_v11, %v29_v8 }
   0x5   :  { %1233 = vmatpush1.msk.msra.mxu0 %vm229_vm0, %v213_v0  ;;  %1236 = vmatpush1.msk.msra.mxu1 %vm229_vm0, %v214_v1  ;;  %v38_v17 = vld [vmem:[%s2571_s2 + $0x50] sm:$0xff]  ;;  %v45_v18 = vld [vmem:[%s2571_s2 + $0x88] sm:$0xff]  ;;  %v1509_v20 = vpack.c.bf16 %v39_v13, %v31_v12  ;;  %v47_v22 = vld [vmem:[%s2571_s2 + $0x98] sm:$0xff]  ;;  %v1467_v24 = vpack.c.bf16 %v36_v15, %v28_v14 }
   0x6   :  { %1234 = vmatmul.mubr.msk.f32.vlgmr.msra.gmra.mrb[0].mxu0 %vm225_vm1, %v212_v3  ;;  %1237 = vmatmul.mubr.msk.f32.vlgmr.msra.gmra.mrb[0].mxu1 %vm225_vm1, %v212_v3  ;;  %v53_v21 = vld [vmem:[%s2571_s2 + $0xc8] sm:$0xff]  ;;  %v55_v23 = vld [vmem:[%s2571_s2 + $0xd8] sm:$0xff]  ;;  %v1511_v25 = vpack.c.bf16 %v38_v17, %v30_v16  ;;  %v44_v26 = vld [vmem:[%s2571_s2 + $0x80] sm:$0xff] }
   0x7   :  { %1238 = vmatprep.subr.msk.mxu0 %vm229_vm0, %v223_v9  ;;  %1241 = vmatprep.subr.msk.mxu1 %vm229_vm0, %v224_v10  ;;  %v52_v27 = vld [vmem:[%s2571_s2 + $0xc0] sm:$0xff]  ;;  %v1469_v28 = vpack.c.bf16 %v53_v21, %v45_v18  ;;  %v1513_v29 = vpack.c.bf16 %v55_v23, %v47_v22  ;;  %v46_v30 = vld [vmem:[%s2571_s2 + $0x90] sm:$0xff]  ;;  %v61_v32 = vld [vmem:[%s2571_s2 + $0x108] sm:$0xff] }
   0x8   :  { %1239 = vmatpush1.msk.msra.mxu0 %vm229_vm0, %v215_v6  ;;  %1242 = vmatpush1.msk.msra.mxu1 %vm229_vm0, %v216_v7  ;;  %v54_v31 = vld [vmem:[%s2571_s2 + $0xd0] sm:$0xff]  ;;  %v69_v33 = vld [vmem:[%s2571_s2 + $0x148] sm:$0xff]  ;;  %v63_v34 = vld [vmem:[%s2571_s2 + $0x118] sm:$0xff]  ;;  %v1471_v36 = vpack.c.bf16 %v52_v27, %v44_v26 }
   0x9   :  { %452 = vmatprep.mubr.f32.mxu0 %v1762_v2  ;;  %523 = vmatprep.mubr.f32.mxu1 %v1762_v2  ;;  %v71_v35 = vld [vmem:[%s2571_s2 + $0x158] sm:$0xff]  ;;  %v1515_v37 = vpack.c.bf16 %v54_v31, %v46_v30  ;;  %v60_v38 = vld [vmem:[%s2571_s2 + $0x100] sm:$0xff]  ;;  %v1473_v40 = vpack.c.bf16 %v69_v33, %v61_v32  ;;  %v62_v42 = vld [vmem:[%s2571_s2 + $0x110] sm:$0xff] }
   0xa   :  { %1466 = vmatprep.subr.bf16.mxu0 %v1465_v19  ;;  %1510 = vmatprep.subr.bf16.mxu1 %v1509_v20  ;;  %v68_v39 = vld [vmem:[%s2571_s2 + $0x140] sm:$0xff]  ;;  %v1517_v41 = vpack.c.bf16 %v71_v35, %v63_v34  ;;  %v70_v43 = vld [vmem:[%s2571_s2 + $0x150] sm:$0xff]  ;;  %v77_v44 = vld [vmem:[%s2571_s2 + $0x188] sm:$0xff] }
   0xb   :  { %1240 = vmatmul.mubr.msk.f32.vlgmr.msra.gmra.mrb[2].mxu0 %vm225_vm1, %v212_v3  ;;  %1243 = vmatmul.mubr.msk.f32.vlgmr.msra.gmra.mrb[2].mxu1 %vm225_vm1, %v212_v3  ;;  %v85_v45 = vld [vmem:[%s2571_s2 + $0x1c8] sm:$0xff]  ;;  %v79_v46 = vld [vmem:[%s2571_s2 + $0x198] sm:$0xff]  ;;  %v1475_v48 = vpack.c.bf16 %v68_v39, %v60_v38  ;;  %v1519_v49 = vpack.c.bf16 %v70_v43, %v62_v42  ;;  %v76_v50 = vld [vmem:[%s2571_s2 + $0x180] sm:$0xff] }
   0xc   :  { %1468 = vmatpush1.bf16.msra.mxu0 %v1467_v24  ;;  %1512 = vmatpush1.bf16.msra.mxu1 %v1511_v25  ;;  %v87_v47 = vld [vmem:[%s2571_s2 + $0x1d8] sm:$0xff]  ;;  %v84_v51 = vld [vmem:[%s2571_s2 + $0x1c0] sm:$0xff]  ;;  %v1477_v52 = vpack.c.bf16 %v85_v45, %v77_v44  ;;  %v78_v54 = vld [vmem:[%s2571_s2 + $0x190] sm:$0xff] }
   0xd   :  { %1470 = vmatprep.subr.bf16.mxu0 %v1469_v28  ;;  %1514 = vmatprep.subr.bf16.mxu1 %v1513_v29  ;;  %v1521_v53 = vpack.c.bf16 %v87_v47, %v79_v46  ;;  %v86_v55 = vld [vmem:[%s2571_s2 + $0x1d0] sm:$0xff]  ;;  %v93_v56 = vld [vmem:[%s2571_s2 + $0x208] sm:$0xff]  ;;  %v95_v58 = vld [vmem:[%s2571_s2 + $0x218] sm:$0xff]  ;;  %v1479_v60 = vpack.c.bf16 %v84_v51, %v76_v50 }
   0xe   :  { %v101_v57 = vld [vmem:[%s2571_s2 + $0x248] sm:$0xff]  ;;  %v103_v59 = vld [vmem:[%s2571_s2 + $0x258] sm:$0xff]  ;;  %v1523_v61 = vpack.c.bf16 %v86_v55, %v78_v54  ;;  %v92_v62 = vld [vmem:[%s2571_s2 + $0x200] sm:$0xff] }
   0xf   :  { %v100_v63 = vld [vmem:[%s2571_s2 + $0x240] sm:$0xff]  ;;  %v1481_v0 = vpack.c.bf16 %v101_v57, %v93_v56  ;;  %v1525_v1 = vpack.c.bf16 %v103_v59, %v95_v58  ;;  %v94_v3 = vld [vmem:[%s2571_s2 + $0x210] sm:$0xff]  ;;  %v109_v5 = vld [vmem:[%s2571_s2 + $0x288] sm:$0xff] }
  0x10   :  { %1472 = vmatpush1.bf16.msra.mxu0 %v1471_v36  ;;  %1516 = vmatpush1.bf16.msra.mxu1 %v1515_v37  ;;  %v102_v4 = vld [vmem:[%s2571_s2 + $0x250] sm:$0xff]  ;;  %v117_v6 = vld [vmem:[%s2571_s2 + $0x2c8] sm:$0xff]  ;;  %v111_v7 = vld [vmem:[%s2571_s2 + $0x298] sm:$0xff]  ;;  %v1483_v9 = vpack.c.bf16 %v100_v63, %v92_v62 }
  0x11   :  { %1474 = vmatprep.subr.bf16.mxu0 %v1473_v40  ;;  %1518 = vmatprep.subr.bf16.mxu1 %v1517_v41  ;;  %v119_v8 = vld [vmem:[%s2571_s2 + $0x2d8] sm:$0xff]  ;;  %v1527_v10 = vpack.c.bf16 %v102_v4, %v94_v3  ;;  %v108_v11 = vld [vmem:[%s2571_s2 + $0x280] sm:$0xff]  ;;  %v1485_v13 = vpack.c.bf16 %v117_v6, %v109_v5  ;;  %v110_v15 = vld [vmem:[%s2571_s2 + $0x290] sm:$0xff] }
  0x12   :  { %v116_v12 = vld [vmem:[%s2571_s2 + $0x2c0] sm:$0xff]  ;;  %v1529_v14 = vpack.c.bf16 %v119_v8, %v111_v7  ;;  %v118_v16 = vld [vmem:[%s2571_s2 + $0x2d0] sm:$0xff]  ;;  %v125_v17 = vld [vmem:[%s2571_s2 + $0x308] sm:$0xff] }
  0x13   :  { %v133_v18 = vld [vmem:[%s2571_s2 + $0x348] sm:$0xff]  ;;  %v127_v19 = vld [vmem:[%s2571_s2 + $0x318] sm:$0xff]  ;;  %v1487_v21 = vpack.c.bf16 %v116_v12, %v108_v11  ;;  %v1531_v22 = vpack.c.bf16 %v118_v16, %v110_v15  ;;  %v124_v23 = vld [vmem:[%s2571_s2 + $0x300] sm:$0xff] }
  0x14   :  { %1476 = vmatpush1.bf16.msra.mxu0 %v1475_v48  ;;  %1520 = vmatpush1.bf16.msra.mxu1 %v1519_v49  ;;  %v135_v20 = vld [vmem:[%s2571_s2 + $0x358] sm:$0xff]  ;;  %v132_v24 = vld [vmem:[%s2571_s2 + $0x340] sm:$0xff]  ;;  %v1489_v25 = vpack.c.bf16 %v133_v18, %v125_v17  ;;  %v126_v27 = vld [vmem:[%s2571_s2 + $0x310] sm:$0xff] }
  0x15   :  { %1478 = vmatprep.subr.bf16.mxu0 %v1477_v52  ;;  %1522 = vmatprep.subr.bf16.mxu1 %v1521_v53  ;;  %v1533_v26 = vpack.c.bf16 %v135_v20, %v127_v19  ;;  %v134_v28 = vld [vmem:[%s2571_s2 + $0x350] sm:$0xff]  ;;  %v141_v29 = vld [vmem:[%s2571_s2 + $0x388] sm:$0xff]  ;;  %v143_v31 = vld [vmem:[%s2571_s2 + $0x398] sm:$0xff]  ;;  %v1491_v33 = vpack.c.bf16 %v132_v24, %v124_v23 }
  0x16   :  { %v149_v30 = vld [vmem:[%s2571_s2 + $0x3c8] sm:$0xff]  ;;  %v151_v32 = vld [vmem:[%s2571_s2 + $0x3d8] sm:$0xff]  ;;  %v1535_v34 = vpack.c.bf16 %v134_v28, %v126_v27  ;;  %v140_v35 = vld [vmem:[%s2571_s2 + $0x380] sm:$0xff] }
  0x17   :  { %v148_v36 = vld [vmem:[%s2571_s2 + $0x3c0] sm:$0xff]  ;;  %v142_v37 = vld [vmem:[%s2571_s2 + $0x390] sm:$0xff]  ;;  %v1493_v38 = vpack.c.bf16 %v149_v30, %v141_v29  ;;  %v1537_v39 = vpack.c.bf16 %v151_v32, %v143_v31  ;;  %v157_v41 = vld [vmem:[%s2571_s2 + $0x408] sm:$0xff] }
  0x18   :  { %1480 = vmatpush1.bf16.msra.mxu0 %v1479_v60  ;;  %1524 = vmatpush1.bf16.msra.mxu1 %v1523_v61  ;;  %v150_v40 = vld [vmem:[%s2571_s2 + $0x3d0] sm:$0xff]  ;;  %v2034_v42 = vld [vmem:[%s2572_s0 + $0x8] sm:$0xff]  ;;  %v159_v44 = vld [vmem:[%s2571_s2 + $0x418] sm:$0xff]  ;;  %v1495_v46 = vpack.c.bf16 %v148_v36, %v140_v35 }
  0x19   :  { %1482 = vmatprep.subr.bf16.mxu0 %v1481_v0  ;;  %1526 = vmatprep.subr.bf16.mxu1 %v1525_v1  ;;  %v165_v43 = vld [vmem:[%s2571_s2 + $0x448] sm:$0xff]  ;;  %v167_v45 = vld [vmem:[%s2571_s2 + $0x458] sm:$0xff]  ;;  %v1539_v47 = vpack.c.bf16 %v150_v40, %v142_v37  ;;  %v156_v48 = vld [vmem:[%s2571_s2 + $0x400] sm:$0xff] }
  0x1a   :  { %1246 = vmatprep.mubr.msk.f32.mxu0 %vm530_vm2, %v2034_v42  ;;  %1249 = vmatprep.mubr.msk.f32.mxu1 %vm530_vm2, %v2034_v42  ;;  %v164_v49 = vld [vmem:[%s2571_s2 + $0x440] sm:$0xff]  ;;  %v1497_v50 = vpack.c.bf16 %v165_v43, %v157_v41  ;;  %v1541_v51 = vpack.c.bf16 %v167_v45, %v159_v44  ;;  %v158_v52 = vld [vmem:[%s2571_s2 + $0x410] sm:$0xff]  ;;  %v173_v54 = vld [vmem:[%s2571_s2 + $0x488] sm:$0xff] }
  0x1b   :  { %v166_v53 = vld [vmem:[%s2571_s2 + $0x450] sm:$0xff]  ;;  %v181_v55 = vld [vmem:[%s2571_s2 + $0x4c8] sm:$0xff]  ;;  %v175_v56 = vld [vmem:[%s2571_s2 + $0x498] sm:$0xff]  ;;  %v1499_v58 = vpack.c.bf16 %v164_v49, %v156_v48 }
  0x1c   :  { %1484 = vmatpush1.bf16.msra.mxu0 %v1483_v9  ;;  %1528 = vmatpush1.bf16.msra.mxu1 %v1527_v10  ;;  %v183_v57 = vld [vmem:[%s2571_s2 + $0x4d8] sm:$0xff]  ;;  %v1543_v59 = vpack.c.bf16 %v166_v53, %v158_v52  ;;  %v172_v60 = vld [vmem:[%s2571_s2 + $0x480] sm:$0xff]  ;;  %v1501_v62 = vpack.c.bf16 %v181_v55, %v173_v54  ;;  %v174_v0 = vld [vmem:[%s2571_s2 + $0x490] sm:$0xff] }
  0x1d   :  { %1486 = vmatprep.subr.bf16.mxu0 %v1485_v13  ;;  %1530 = vmatprep.subr.bf16.mxu1 %v1529_v14  ;;  %v180_v61 = vld [vmem:[%s2571_s2 + $0x4c0] sm:$0xff]  ;;  %v1545_v63 = vpack.c.bf16 %v183_v57, %v175_v56  ;;  %v182_v1 = vld [vmem:[%s2571_s2 + $0x4d0] sm:$0xff]  ;;  %v189_v3 = vld [vmem:[%s2571_s2 + $0x508] sm:$0xff] }
  0x1e   :  { %v197_v4 = vld [vmem:[%s2571_s2 + $0x548] sm:$0xff]  ;;  %v191_v5 = vld [vmem:[%s2571_s2 + $0x518] sm:$0xff]  ;;  %v1503_v7 = vpack.c.bf16 %v180_v61, %v172_v60  ;;  %v1547_v8 = vpack.c.bf16 %v182_v1, %v174_v0  ;;  %v188_v9 = vld [vmem:[%s2571_s2 + $0x500] sm:$0xff] }
  0x1f   :  { %v199_v6 = vld [vmem:[%s2571_s2 + $0x558] sm:$0xff]  ;;  %v1505_v10 = vpack.c.bf16 %v197_v4, %v189_v3  ;;  %v196_v12 = vld [vmem:[%s2571_s2 + $0x540] sm:$0xff]  ;;  %v190_v13 = vld [vmem:[%s2571_s2 + $0x510] sm:$0xff] }
  0x20   :  { %1488 = vmatpush1.bf16.msra.mxu0 %v1487_v21  ;;  %1532 = vmatpush1.bf16.msra.mxu1 %v1531_v22  ;;  %v1549_v11 = vpack.c.bf16 %v199_v6, %v191_v5  ;;  %v198_v14 = vld [vmem:[%s2571_s2 + $0x550] sm:$0xff]  ;;  %v1507_v15 = vpack.c.bf16 %v196_v12, %v188_v9  ;;  %v205_v17 = vld [vmem:[%s2571_s2 + $0x588] sm:$0xf]  ;;  %v207_v18 = vld [vmem:[%s2571_s2 + $0x598] sm:$0xf] }
  0x21   :  { %1490 = vmatprep.subr.bf16.mxu0 %v1489_v25  ;;  %1534 = vmatprep.subr.bf16.mxu1 %v1533_v26  ;;  %v1551_v16 = vpack.c.bf16 %v198_v14, %v190_v13  ;;  %v33_v19 = vld [vmem:[%s2571_s2 + $0x28] sm:$0xff]  ;;  %v35_v21 = vld [vmem:[%s2571_s2 + $0x38] sm:$0xff]  ;;  %v204_v22 = vld [vmem:[%s2571_s2 + $0x580] sm:$0xf] }
  0x22   :  { %v41_v20 = vld [vmem:[%s2571_s2 + $0x68] sm:$0xff]  ;;  %v206_v23 = vld [vmem:[%s2571_s2 + $0x590] sm:$0xf]  ;;  %v43_v24 = vld [vmem:[%s2571_s2 + $0x78] sm:$0xff] }
  0x23   :  { %v32_v25 = vld [vmem:[%s2571_s2 + $0x20] sm:$0xff]  ;;  %v34_v27 = vld [vmem:[%s2571_s2 + $0x30] sm:$0xff]  ;;  %v49_v29 = vld [vmem:[%s2571_s2 + $0xa8] sm:$0xff]  ;;  %v1597_v35 = vpack.c.bf16 %v43_v24, %v35_v21 }
  0x24   :  { %1492 = vmatpush1.bf16.msra.mxu0 %v1491_v33  ;;  %1536 = vmatpush1.bf16.msra.mxu1 %v1535_v34  ;;  %v40_v26 = vld [vmem:[%s2571_s2 + $0x60] sm:$0xff]  ;;  %v42_v28 = vld [vmem:[%s2571_s2 + $0x70] sm:$0xff]  ;;  %v57_v30 = vld [vmem:[%s2571_s2 + $0xe8] sm:$0xff]  ;;  %v1553_v34 = vpack.c.bf16 %v41_v20, %v33_v19 }
  0x25   :  { %1494 = vmatprep.subr.bf16.mxu0 %v1493_v38  ;;  %1538 = vmatprep.subr.bf16.mxu1 %v1537_v39  ;;  %v51_v31 = vld [vmem:[%s2571_s2 + $0xb8] sm:$0xff]  ;;  %v2162_v33 = vld [vmem:[%s2572_s0] sm:$0xff]  ;;  %v1555_v36 = vpack.c.bf16 %v40_v26, %v32_v25  ;;  %v1599_v37 = vpack.c.bf16 %v42_v28, %v34_v27  ;;  %v1557_v40 = vpack.c.bf16 %v57_v30, %v49_v29  ;;  %v50_v43 = vld [vmem:[%s2571_s2 + $0xb0] sm:$0xff] }
  0x26   :  { %v59_v32 = vld [vmem:[%s2571_s2 + $0xf8] sm:$0xff]  ;;  %v48_v38 = vld [vmem:[%s2571_s2 + $0xa0] sm:$0xff]  ;;  %v58_v44 = vld [vmem:[%s2571_s2 + $0xf0] sm:$0xff] }
  0x27   :  { %v56_v39 = vld [vmem:[%s2571_s2 + $0xe0] sm:$0xff]  ;;  %v1601_v41 = vpack.c.bf16 %v59_v32, %v51_v31  ;;  %v65_v45 = vld [vmem:[%s2571_s2 + $0x128] sm:$0xff]  ;;  %v75_v48 = vld [vmem:[%s2571_s2 + $0x178] sm:$0xff] }
  0x28   :  { %1496 = vmatpush1.bf16.msra.mxu0 %v1495_v46  ;;  %1540 = vmatpush1.bf16.msra.mxu1 %v1539_v47  ;;  %v73_v46 = vld [vmem:[%s2571_s2 + $0x168] sm:$0xff]  ;;  %v67_v47 = vld [vmem:[%s2571_s2 + $0x138] sm:$0xff]  ;;  %v1559_v49 = vpack.c.bf16 %v56_v39, %v48_v38  ;;  %v72_v52 = vld [vmem:[%s2571_s2 + $0x160] sm:$0xff] }
  0x29   :  { %1498 = vmatprep.subr.bf16.mxu0 %v1497_v50  ;;  %1542 = vmatprep.subr.bf16.mxu1 %v1541_v51  ;;  %v1603_v50 = vpack.c.bf16 %v58_v44, %v50_v43  ;;  %v64_v51 = vld [vmem:[%s2571_s2 + $0x120] sm:$0xff]  ;;  %v1561_v53 = vpack.c.bf16 %v73_v46, %v65_v45  ;;  %v1605_v54 = vpack.c.bf16 %v75_v48, %v67_v47  ;;  %v66_v55 = vld [vmem:[%s2571_s2 + $0x130] sm:$0xff]  ;;  %v81_v57 = vld [vmem:[%s2571_s2 + $0x1a8] sm:$0xff] }
  0x2a   :  { %v74_v56 = vld [vmem:[%s2571_s2 + $0x170] sm:$0xff]  ;;  %v91_v60 = vld [vmem:[%s2571_s2 + $0x1f8] sm:$0xff]  ;;  %v1563_v61 = vpack.c.bf16 %v72_v52, %v64_v51  ;;  %v88_v0 = vld [vmem:[%s2571_s2 + $0x1e0] sm:$0xff] }
  0x2b   :  { %v90_v4 = vld [vmem:[%s2571_s2 + $0x1f0] sm:$0xff]  ;;  %v97_v5 = vld [vmem:[%s2571_s2 + $0x228] sm:$0xff]  ;;  %v104_v12 = vld [vmem:[%s2571_s2 + $0x260] sm:$0xff] }
  0x2c   :  { %1500 = vmatpush1.bf16.msra.mxu0 %v1499_v58  ;;  %1544 = vmatpush1.bf16.msra.mxu1 %v1543_v59  ;;  %v89_v58 = vld [vmem:[%s2571_s2 + $0x1e8] sm:$0xff]  ;;  %v83_v59 = vld [vmem:[%s2571_s2 + $0x1b8] sm:$0xff]  ;;  %v120_v24 = vld [vmem:[%s2571_s2 + $0x2e0] sm:$0xff] }
  0x2d   :  { %1502 = vmatprep.subr.bf16.mxu0 %v1501_v62  ;;  %1546 = vmatprep.subr.bf16.mxu1 %v1545_v63  ;;  %v1607_v62 = vpack.c.bf16 %v74_v56, %v66_v55  ;;  %v80_v63 = vld [vmem:[%s2571_s2 + $0x1a0] sm:$0xff]  ;;  %v1565_v1 = vpack.c.bf16 %v89_v58, %v81_v57  ;;  %v1609_v3 = vpack.c.bf16 %v91_v60, %v83_v59  ;;  %v105_v6 = vld [vmem:[%s2571_s2 + $0x268] sm:$0xff]  ;;  %v115_v19 = vld [vmem:[%s2571_s2 + $0x2b8] sm:$0xff] }
  0x2e   :  { %v1567_v9 = vpack.c.bf16 %v88_v0, %v80_v63  ;;  %v1569_v13 = vpack.c.bf16 %v105_v6, %v97_v5  ;;  %v123_v20 = vld [vmem:[%s2571_s2 + $0x2f8] sm:$0xff]  ;;  %v114_v27 = vld [vmem:[%s2571_s2 + $0x2b0] sm:$0xff]  ;;  %v129_v29 = vld [vmem:[%s2571_s2 + $0x328] sm:$0xff] }
  0x2f   :  { %v1617_v26 = vpack.c.bf16 %v123_v20, %v115_v19  ;;  %v122_v28 = vld [vmem:[%s2571_s2 + $0x2f0] sm:$0xff]  ;;  %v137_v30 = vld [vmem:[%s2571_s2 + $0x368] sm:$0xff]  ;;  %v131_v31 = vld [vmem:[%s2571_s2 + $0x338] sm:$0xff] }
  0x30   :  { %1504 = vmatpush1.bf16.msra.mxu0 %v1503_v7  ;;  %1548 = vmatpush1.bf16.msra.mxu1 %v1547_v8  ;;  %v99_v7 = vld [vmem:[%s2571_s2 + $0x238] sm:$0xff]  ;;  %v1577_v38 = vpack.c.bf16 %v137_v30, %v129_v29  ;;  %v145_v43 = vld [vmem:[%s2571_s2 + $0x3a8] sm:$0xff] }
  0x31   :  { %1506 = vmatprep.subr.bf16.mxu0 %v1505_v10  ;;  %1550 = vmatprep.subr.bf16.mxu1 %v1549_v11  ;;  %v107_v8 = vld [vmem:[%s2571_s2 + $0x278] sm:$0xff]  ;;  %v96_v11 = vld [vmem:[%s2571_s2 + $0x220] sm:$0xff]  ;;  %v153_v44 = vld [vmem:[%s2571_s2 + $0x3e8] sm:$0xff] }
  0x32   :  { %v1613_v14 = vpack.c.bf16 %v107_v8, %v99_v7  ;;  %v1571_v21 = vpack.c.bf16 %v104_v12, %v96_v11  ;;  %v139_v32 = vld [vmem:[%s2571_s2 + $0x378] sm:$0xff]  ;;  %v1581_v51 = vpack.c.bf16 %v153_v44, %v145_v43  ;;  %v161_v55 = vld [vmem:[%s2571_s2 + $0x428] sm:$0xff]  ;;  %v902_v44 = vld [vmem:[%s2573_s5 + $0x30] sm:$0xff] }
  0x33   :  { %v1621_v39 = vpack.c.bf16 %v139_v32, %v131_v31  ;;  %v147_v45 = vld [vmem:[%s2571_s2 + $0x3b8] sm:$0xff]  ;;  %v169_v56 = vld [vmem:[%s2571_s2 + $0x468] sm:$0xff]  ;;  %v896_v31 = vld [vmem:[%s2573_s5] sm:$0xff] }
  0x34   :  { %1508 = vmatpush1.bf16.msra.mxu0 %v1507_v15  ;;  %1552 = vmatpush1.bf16.msra.mxu1 %v1551_v16  ;;  %v98_v15 = vld [vmem:[%s2571_s2 + $0x230] sm:$0xff]  ;;  %v155_v46 = vld [vmem:[%s2571_s2 + $0x3f8] sm:$0xff]  ;;  %v1585_v63 = vpack.c.bf16 %v169_v56, %v161_v55  ;;  %v209_v29 = vld [vmem:[%s2571_s2 + $0x5a8] sm:$0xf] }
  0x35   :  { %1244 = vmatprep.subr.msk.mxu0 %vm229_vm0, %v205_v17  ;;  %1247 = vmatprep.subr.msk.mxu1 %vm229_vm0, %v207_v18  ;;  %v106_v16 = vld [vmem:[%s2571_s2 + $0x270] sm:$0xff]  ;;  %v113_v17 = vld [vmem:[%s2571_s2 + $0x2a8] sm:$0xff]  ;;  %v1625_v52 = vpack.c.bf16 %v155_v46, %v147_v45  ;;  %v163_v57 = vld [vmem:[%s2571_s2 + $0x438] sm:$0xff] }
  0x36   :  { %v121_v18 = vld [vmem:[%s2571_s2 + $0x2e8] sm:$0xff]  ;;  %v171_v58 = vld [vmem:[%s2571_s2 + $0x478] sm:$0xff]  ;;  %v910_v56 = vld [vmem:[%s2573_s5 + $0x70] sm:$0xff] }
  0x37   :  { %v1573_v25 = vpack.c.bf16 %v121_v18, %v113_v17  ;;  %v1629_v0 = vpack.c.bf16 %v171_v58, %v163_v57  ;;  %v179_v5 = vld [vmem:[%s2571_s2 + $0x4b8] sm:$0xff]  ;;  %v897_v32 = vld [vmem:[%s2573_s5 + $0x8] sm:$0xff] }
  0x38   :  { %1245 = vmatpush1.msk.msra.mxu0 %vm229_vm0, %v204_v22  ;;  %1248 = vmatpush1.msk.msra.mxu1 %vm229_vm0, %v206_v23  ;;  %v1615_v22 = vpack.c.bf16 %v106_v16, %v98_v15  ;;  %v112_v23 = vld [vmem:[%s2571_s2 + $0x2a0] sm:$0xff]  ;;  %v187_v6 = vld [vmem:[%s2571_s2 + $0x4f8] sm:$0xff]  ;;  %v193_v15 = vld [vmem:[%s2571_s2 + $0x528] sm:$0xff] }
  0x39   :  { %623 = vmatmul.mubr.f32.vlgmr.msra.gmra.mrb[0].mxu0 %v2162_v33  ;;  %694 = vmatmul.mubr.f32.vlgmr.msra.gmra.mrb[0].mxu1 %v2162_v33  ;;  %v1633_v12 = vpack.c.bf16 %v187_v6, %v179_v5  ;;  %v201_v16 = vld [vmem:[%s2571_s2 + $0x568] sm:$0xff]  ;;  %v195_v17 = vld [vmem:[%s2571_s2 + $0x538] sm:$0xff] }
  0x3a   :  { %1554 = vmatprep.subr.bf16.mxu0 %v1553_v34  ;;  %1598 = vmatprep.subr.bf16.mxu1 %v1597_v35  ;;  %v1575_v34 = vpack.c.bf16 %v120_v24, %v112_v23  ;;  %v1619_v35 = vpack.c.bf16 %v122_v28, %v114_v27  ;;  %v203_v18 = vld [vmem:[%s2571_s2 + $0x578] sm:$0xff]  ;;  %v200_v24 = vld [vmem:[%s2571_s2 + $0x560] sm:$0xff] }
  0x3b   :  { %1556 = vmatpush1.bf16.msra.mxu0 %v1555_v36  ;;  %1600 = vmatpush1.bf16.msra.mxu1 %v1599_v37  ;;  %v128_v36 = vld [vmem:[%s2571_s2 + $0x320] sm:$0xff]  ;;  %v1637_v23 = vpack.c.bf16 %v203_v18, %v195_v17  ;;  %v211_v30 = vld [vmem:[%s2571_s2 + $0x5b8] sm:$0xf] }
  0x3c   :  { %1558 = vmatprep.subr.bf16.mxu0 %v1557_v40  ;;  %1602 = vmatprep.subr.bf16.mxu1 %v1601_v41  ;;  %v136_v37 = vld [vmem:[%s2571_s2 + $0x360] sm:$0xff]  ;;  %v130_v40 = vld [vmem:[%s2571_s2 + $0x330] sm:$0xff]  ;;  %v903_v45 = vld [vmem:[%s2573_s5 + $0x38] sm:$0xff] }
  0x3d   :  { %1252 = vmatprep.mubr.msk.f32.mxu0 %vm530_vm2, %v2034_v42  ;;  %1255 = vmatprep.mubr.msk.f32.mxu1 %vm530_vm2, %v2034_v42  ;;  %v82_v42 = vld [vmem:[%s2571_s2 + $0x1b0] sm:$0xff]  ;;  %v1579_v47 = vpack.c.bf16 %v136_v37, %v128_v36  ;;  %v2420_v36 = vpack.c.bf16 %v897_v32, %v896_v31  ;;  %v2460_v46 = vpack.c.bf16 %v903_v45, %v902_v44  ;;  %v911_v57 = vld [vmem:[%s2573_s5 + $0x78] sm:$0xff] }
  0x3e   :  { %v1611_v10 = vpack.c.bf16 %v90_v4, %v82_v42  ;;  %v138_v41 = vld [vmem:[%s2571_s2 + $0x370] sm:$0xff]  ;;  %v177_v42 = vld [vmem:[%s2571_s2 + $0x4a8] sm:$0xff]  ;;  %v2510_v58 = vpack.c.bf16 %v911_v57, %v910_v56 }
  0x3f   :  { %1560 = vmatpush1.bf16.msra.mxu0 %v1559_v49  ;;  %1604 = vmatpush1.bf16.msra.mxu1 %v1603_v50  ;;  %v1623_v48 = vpack.c.bf16 %v138_v41, %v130_v40  ;;  %v144_v49 = vld [vmem:[%s2571_s2 + $0x3a0] sm:$0xff]  ;;  %v185_v4 = vld [vmem:[%s2571_s2 + $0x4e8] sm:$0xff]  ;;  %v898_v37 = vld [vmem:[%s2573_s5 + $0x10] sm:$0xff] }
  0x40   :  { %1562 = vmatprep.subr.bf16.mxu0 %v1561_v53  ;;  %1606 = vmatprep.subr.bf16.mxu1 %v1605_v54  ;;  %v152_v50 = vld [vmem:[%s2571_s2 + $0x3e0] sm:$0xff]  ;;  %v146_v53 = vld [vmem:[%s2571_s2 + $0x3b0] sm:$0xff]  ;;  %v1589_v11 = vpack.c.bf16 %v185_v4, %v177_v42 }
  0x41   :  { %v154_v54 = vld [vmem:[%s2571_s2 + $0x3f0] sm:$0xff]  ;;  %v1583_v59 = vpack.c.bf16 %v152_v50, %v144_v49  ;;  %v900_v41 = vld [vmem:[%s2573_s5 + $0x20] sm:$0xff] }
  0x42   :  { %v1627_v60 = vpack.c.bf16 %v154_v54, %v146_v53  ;;  %v906_v50 = vld [vmem:[%s2573_s5 + $0x50] sm:$0xff]  ;;  %v908_v53 = vld [vmem:[%s2573_s5 + $0x60] sm:$0xff]  ;;  %v909_v54 = vld [vmem:[%s2573_s5 + $0x68] sm:$0xff] }
  0x43   :  { %1564 = vmatpush1.bf16.msra.mxu0 %v1563_v61  ;;  %1608 = vmatpush1.bf16.msra.mxu1 %v1607_v62  ;;  %v160_v61 = vld [vmem:[%s2571_s2 + $0x420] sm:$0xff]  ;;  %v2496_v55 = vpack.c.bf16 %v909_v54, %v908_v53 }
  0x44   :  { %1566 = vmatprep.subr.bf16.mxu0 %v1565_v1  ;;  %1610 = vmatprep.subr.bf16.mxu1 %v1609_v3  ;;  %v168_v62 = vld [vmem:[%s2571_s2 + $0x460] sm:$0xff]  ;;  %v162_v1 = vld [vmem:[%s2571_s2 + $0x430] sm:$0xff] }
  0x45   :  { %v170_v3 = vld [vmem:[%s2571_s2 + $0x470] sm:$0xff]  ;;  %v1587_v7 = vpack.c.bf16 %v168_v62, %v160_v61 }
  0x46   :  { %v1631_v8 = vpack.c.bf16 %v170_v3, %v162_v1 }
  0x47   :  { %1568 = vmatpush1.bf16.msra.mxu0 %v1567_v9  ;;  %1612 = vmatpush1.bf16.msra.mxu1 %v1611_v10  ;;  %v176_v9 = vld [vmem:[%s2571_s2 + $0x4a0] sm:$0xff] }
  0x48   :  { %1570 = vmatprep.subr.bf16.mxu0 %v1569_v13  ;;  %1614 = vmatprep.subr.bf16.mxu1 %v1613_v14  ;;  %v184_v10 = vld [vmem:[%s2571_s2 + $0x4e0] sm:$0xff]  ;;  %v178_v13 = vld [vmem:[%s2571_s2 + $0x4b0] sm:$0xff] }
  0x49   :  { %v186_v14 = vld [vmem:[%s2571_s2 + $0x4f0] sm:$0xff]  ;;  %v1591_v19 = vpack.c.bf16 %v184_v10, %v176_v9 }
  0x4a   :  { %v1635_v20 = vpack.c.bf16 %v186_v14, %v178_v13 }
  0x4b   :  { %1572 = vmatpush1.bf16.msra.mxu0 %v1571_v21  ;;  %1616 = vmatpush1.bf16.msra.mxu1 %v1615_v22  ;;  %v192_v21 = vld [vmem:[%s2571_s2 + $0x520] sm:$0xff]  ;;  %v1593_v22 = vpack.c.bf16 %v201_v16, %v193_v15 }
  0x4c   :  { %1574 = vmatprep.subr.bf16.mxu0 %v1573_v25  ;;  %1618 = vmatprep.subr.bf16.mxu1 %v1617_v26  ;;  %v194_v25 = vld [vmem:[%s2571_s2 + $0x530] sm:$0xff]  ;;  %v1595_v27 = vpack.c.bf16 %v200_v24, %v192_v21 }
  0x4d   :  { %v202_v26 = vld [vmem:[%s2571_s2 + $0x570] sm:$0xff] }
  0x4e   :  { %v1639_v28 = vpack.c.bf16 %v202_v26, %v194_v25 }
  0x4f   :  { %1576 = vmatpush1.bf16.msra.mxu0 %v1575_v34  ;;  %1620 = vmatpush1.bf16.msra.mxu1 %v1619_v35  ;;  %v208_v34 = vld [vmem:[%s2571_s2 + $0x5a0] sm:$0xf]  ;;  %v210_v35 = vld [vmem:[%s2571_s2 + $0x5b0] sm:$0xf] }
  0x50   :  { %1578 = vmatprep.subr.bf16.mxu0 %v1577_v38  ;;  %1622 = vmatprep.subr.bf16.mxu1 %v1621_v39  ;;  %v899_v38 = vld [vmem:[%s2573_s5 + $0x18] sm:$0xff]  ;;  %v1763_v39 = vmov 0.0|0.0  }
  0x51   :  { %v2436_v40 = vpack.c.bf16 %v899_v38, %v898_v37 }
  0x53   :  { %1580 = vmatpush1.bf16.msra.mxu0 %v1579_v47  ;;  %1624 = vmatpush1.bf16.msra.mxu1 %v1623_v48  ;;  %v904_v47 = vld [vmem:[%s2573_s5 + $0x40] sm:$0xff]  ;;  %v905_v48 = vld [vmem:[%s2573_s5 + $0x48] sm:$0xff] }
  0x54   :  { %1582 = vmatprep.subr.bf16.mxu0 %v1581_v51  ;;  %1626 = vmatprep.subr.bf16.mxu1 %v1625_v52  ;;  %v2472_v49 = vpack.c.bf16 %v905_v48, %v904_v47  ;;  %v907_v51 = vld [vmem:[%s2573_s5 + $0x58] sm:$0xff] }
  0x55   :  { %v2484_v52 = vpack.c.bf16 %v907_v51, %v906_v50 }
  0x57   :  { %1584 = vmatpush1.bf16.msra.mxu0 %v1583_v59  ;;  %1628 = vmatpush1.bf16.msra.mxu1 %v1627_v60  ;;  %v844_v59 = vlaneseq }
  0x58   :  { %1586 = vmatprep.subr.bf16.mxu0 %v1585_v63  ;;  %1630 = vmatprep.subr.bf16.mxu1 %v1629_v0  ;;  %v842_v63 = vld [vmem:[%s2574_s4] sm:$0xff] }
  0x59   :  { %v845_v60 = vshrl.u32 %v844_v59, 7 }
  0x5b   :  { %1588 = vmatpush1.bf16.msra.mxu0 %v1587_v7  ;;  %1632 = vmatpush1.bf16.msra.mxu1 %v1631_v8  ;;  %v862_v61 = vsub.s32 4, %v845_v60  ;;  %v870_v62 = vsub.s32 6, %v845_v60  ;;  %v866_v0 = vsub.s32 5, %v845_v60  ;;  %v874_v1 = vsub.s32 7, %v845_v60 }
  0x5c   :  { %1590 = vmatprep.subr.bf16.mxu0 %v1589_v11  ;;  %1634 = vmatprep.subr.bf16.mxu1 %v1633_v12  ;;  %v846_v6 = vsub.s32 0, %v845_v60  ;;  %v850_v7 = vsub.s32 1, %v845_v60  ;;  %v858_v18 = vsub.s32 3, %v845_v60 }
  0x5d   :  { %v863_v3 = vrot.slane %v842_v63, %v862_v61  ;;  %v871_v42 = vrot.slane %v842_v63, %v870_v62  ;;  %v2523_v4 = vrot.slane %v842_v63, %v866_v0  ;;  %v2525_v5 = vrot.slane %v842_v63, %v874_v1 }
  0x5e   :  { %v847_v8 = vrot.slane %v842_v63, %v846_v6  ;;  %v851_v9 = vrot.slane %v842_v63, %v850_v7 }
  0x5f   :  { %1592 = vmatpush1.bf16.msra.mxu0 %v1591_v19  ;;  %1636 = vmatpush1.bf16.msra.mxu1 %v1635_v20  ;;  %v859_v20 = vrot.slane %v842_v63, %v858_v18 }
  0x60   :  { %1594 = vmatprep.subr.bf16.mxu0 %v1593_v22  ;;  %1638 = vmatprep.subr.bf16.mxu1 %v1637_v23 }
  0x63   :  { %1596 = vmatpush1.bf16.msra.mxu0 %v1595_v27  ;;  %1640 = vmatpush1.bf16.msra.mxu1 %v1639_v28 }
  0x64   :  { %1250 = vmatprep.subr.msk.mxu0 %vm229_vm0, %v209_v29  ;;  %1253 = vmatprep.subr.msk.mxu1 %vm229_vm0, %v211_v30 }
  0x67   :  { %1251 = vmatpush1.msk.msra.mxu0 %vm229_vm0, %v208_v34  ;;  %1254 = vmatpush1.msk.msra.mxu1 %vm229_vm0, %v210_v35 }
  0x68   :  { %765 = vmatmul.mubr.f32.vlgmr.msra.gmra.mrb[2].mxu0 %v2162_v33  ;;  %836 = vmatmul.mubr.f32.vlgmr.msra.gmra.mrb[2].mxu1 %v2162_v33  ;;  %v901_v33 = vld [vmem:[%s2573_s5 + $0x28] sm:$0xff] }
  0x69   :  { %1641 = vmatprep.subr.bf16.mxu0 %v1763_v39  ;;  %1665 = vmatprep.subr.bf16.mxu1 %v1763_v39  ;;  %v2448_v43 = vpack.c.bf16 %v901_v33, %v900_v41 }
  0x6a   :  { %1643 = vmatpush3.bf16.msra.mxu0 %v2420_v36  ;;  %1667 = vmatpush3.bf16.msra.mxu1 %v2420_v36 }
  0x6b   :  { %1644 = vmatprep.subr.bf16.mxu0 %v1763_v39  ;;  %1668 = vmatprep.subr.bf16.mxu1 %v1763_v39 }
  0x6c   :  { %1357 = vmatprep.mubr.msk.f32.mxu0 %vm1764_vm3, %v1762_v2  ;;  %1392 = vmatprep.mubr.msk.f32.mxu1 %vm1764_vm3, %v1762_v2 }
  0x6e   :  { %1646 = vmatpush3.bf16.msra.mxu0 %v2436_v40  ;;  %1670 = vmatpush3.bf16.msra.mxu1 %v2436_v40 }
  0x6f   :  { %1647 = vmatprep.subr.bf16.mxu0 %v1763_v39  ;;  %1671 = vmatprep.subr.bf16.mxu1 %v1763_v39 }
  0x72   :  { %1649 = vmatpush3.bf16.msra.mxu0 %v2448_v43  ;;  %1673 = vmatpush3.bf16.msra.mxu1 %v2448_v43 }
  0x73   :  { %1650 = vmatprep.subr.bf16.mxu0 %v1763_v39  ;;  %1674 = vmatprep.subr.bf16.mxu1 %v1763_v39 }
  0x76   :  { %1652 = vmatpush3.bf16.msra.mxu0 %v2460_v46  ;;  %1676 = vmatpush3.bf16.msra.mxu1 %v2460_v46 }
  0x77   :  { %1653 = vmatprep.subr.bf16.mxu0 %v1763_v39  ;;  %1677 = vmatprep.subr.bf16.mxu1 %v1763_v39 }
  0x7a   :  { %1655 = vmatpush3.bf16.msra.mxu0 %v2472_v49  ;;  %1679 = vmatpush3.bf16.msra.mxu1 %v2472_v49 }
  0x7b   :  { %1656 = vmatprep.subr.bf16.mxu0 %v1763_v39  ;;  %1680 = vmatprep.subr.bf16.mxu1 %v1763_v39 }
  0x7e   :  { %1658 = vmatpush3.bf16.msra.mxu0 %v2484_v52  ;;  %1682 = vmatpush3.bf16.msra.mxu1 %v2484_v52 }
  0x7f   :  { %1659 = vmatprep.subr.bf16.mxu0 %v1763_v39  ;;  %1683 = vmatprep.subr.bf16.mxu1 %v1763_v39 }
  0x82   :  { %1661 = vmatpush3.bf16.msra.mxu0 %v2496_v55  ;;  %1685 = vmatpush3.bf16.msra.mxu1 %v2496_v55 }
  0x83   :  { %1662 = vmatprep.subr.bf16.mxu0 %v1763_v39  ;;  %1686 = vmatprep.subr.bf16.mxu1 %v1763_v39 }
  0x86   :  { %1664 = vmatpush3.bf16.msra.mxu0 %v2510_v58  ;;  %1688 = vmatpush3.bf16.msra.mxu1 %v2510_v58 }
  0x87   :  { %1689 = vmatprep.subr.bf16.mxu0 %v1763_v39  ;;  %1713 = vmatprep.subr.bf16.mxu1 %v1763_v39 }
 0x10c   :  { %v624_v10 = vpop.f32.mrb[0].mxu0  ;;  %v695_v11 = vpop.f32.mrb[0].mxu1 }
 0x10d   :  { %v884_v12 = vadd.f32 %v847_v8, %v624_v10  ;;  %v626_v13 = vpop.f32.mrb[1].mxu0  ;;  %v697_v14 = vpop.f32.mrb[1].mxu1 }
 0x10e   :  { %v885_v15 = vadd.f32 %v851_v9, %v626_v13  ;;  %v887_v22 = vadd.f32 %v859_v20, %v697_v14 }
 0x10f   :  { %v892_v16 = vmax.f32 %v884_v12, 0.0 }
 0x110   :  { %v893_v17 = vmax.f32 %v885_v15, 0.0  ;;  %v895_v24 = vmax.f32 %v887_v22, 0.0 }
 0x111   :  { %1358 = vmatmul.mubr.f32.vlgmr.msra.gmra.mrb[4].mxu0 %v892_v16 }
 0x112   :  { %1691 = vmatpush3.bf16.msra.mxu0 %v2420_v36  ;;  %1393 = vmatmul.mubr.f32.vlgmr.msra.gmra.mrb[4].mxu1 %v893_v17 }
 0x113   :  { %1715 = vmatpush3.bf16.msra.mxu1 %v2420_v36  ;;  %1692 = vmatprep.subr.bf16.mxu0 %v1763_v39 }
 0x114   :  { %1716 = vmatprep.subr.bf16.mxu1 %v1763_v39  ;;  %1427 = vmatprep.mubr.msk.f32.mxu0 %vm1764_vm3, %v1762_v2 }
 0x115   :  { %1462 = vmatprep.mubr.msk.f32.mxu1 %vm1764_vm3, %v1762_v2  ;;  %v854_v2 = vsub.s32 2, %v845_v60 }
 0x116   :  { %1694 = vmatpush3.bf16.msra.mxu0 %v2436_v40 }
 0x117   :  { %1718 = vmatpush3.bf16.msra.mxu1 %v2436_v40  ;;  %1695 = vmatprep.subr.bf16.mxu0 %v1763_v39  ;;  %v855_v19 = vrot.slane %v842_v63, %v854_v2 }
 0x118   :  { %1719 = vmatprep.subr.bf16.mxu1 %v1763_v39 }
 0x119   :  { %v886_v21 = vadd.f32 %v855_v19, %v695_v11 }
 0x11a   :  { %1697 = vmatpush3.bf16.msra.mxu0 %v2448_v43 }
 0x11b   :  { %1721 = vmatpush3.bf16.msra.mxu1 %v2448_v43  ;;  %1698 = vmatprep.subr.bf16.mxu0 %v1763_v39  ;;  %v894_v23 = vmax.f32 %v886_v21, 0.0 }
 0x11c   :  { %1722 = vmatprep.subr.bf16.mxu1 %v1763_v39 }
 0x11e   :  { %1700 = vmatpush3.bf16.msra.mxu0 %v2460_v46 }
 0x11f   :  { %1724 = vmatpush3.bf16.msra.mxu1 %v2460_v46  ;;  %1701 = vmatprep.subr.bf16.mxu0 %v1763_v39 }
 0x120   :  { %1725 = vmatprep.subr.bf16.mxu1 %v1763_v39 }
 0x122   :  { %1703 = vmatpush3.bf16.msra.mxu0 %v2472_v49 }
 0x123   :  { %1727 = vmatpush3.bf16.msra.mxu1 %v2472_v49  ;;  %1704 = vmatprep.subr.bf16.mxu0 %v1763_v39 }
 0x124   :  { %1728 = vmatprep.subr.bf16.mxu1 %v1763_v39 }
 0x126   :  { %1706 = vmatpush3.bf16.msra.mxu0 %v2484_v52 }
 0x127   :  { %1730 = vmatpush3.bf16.msra.mxu1 %v2484_v52  ;;  %1707 = vmatprep.subr.bf16.mxu0 %v1763_v39 }
 0x128   :  { %1731 = vmatprep.subr.bf16.mxu1 %v1763_v39 }
 0x12a   :  { %1709 = vmatpush3.bf16.msra.mxu0 %v2496_v55 }
 0x12b   :  { %1733 = vmatpush3.bf16.msra.mxu1 %v2496_v55  ;;  %1710 = vmatprep.subr.bf16.mxu0 %v1763_v39 }
 0x12c   :  { %1734 = vmatprep.subr.bf16.mxu1 %v1763_v39 }
 0x12e   :  { %1712 = vmatpush3.bf16.msra.mxu0 %v2510_v58 }
 0x12f   :  { %1736 = vmatpush3.bf16.msra.mxu1 %v2510_v58 }
 0x131   :  { %1428 = vmatmul.mubr.f32.vlgmr.msra.gmra.mrb[6].mxu0 %v894_v23 }
 0x132   :  { %1463 = vmatmul.mubr.f32.vlgmr.msra.gmra.mrb[6].mxu1 %v895_v24 }
 0x13b   :  { %v766_v25 = vpop.f32.mrb[2].mxu0  ;;  %v837_v26 = vpop.f32.mrb[2].mxu1 }
 0x13c   :  { %v888_v27 = vadd.f32 %v863_v3, %v766_v25  ;;  %v890_v28 = vadd.f32 %v871_v42, %v837_v26  ;;  %v768_v29 = vpop.f32.mrb[3].mxu0  ;;  %v839_v30 = vpop.f32.mrb[3].mxu1 }
 0x13d   :  { %v889_v31 = vadd.f32 %v2523_v4, %v768_v29  ;;  %v891_v32 = vadd.f32 %v2525_v5, %v839_v30  ;;  %v1256_v4 = vld [vmem:[%s2575_s6] ss:$0 sm:$0xff] }
 0x13f   :  { %v912_v34 = vmax.f32 %v888_v27, %v889_v31 }
 0x141   :  { %v913_v35 = vmax.f32 %v912_v34, %v890_v28 }
 0x143   :  { %v914_v36 = vmax.f32 %v913_v35, %v891_v32 }
 0x145   :  { %v915_v37 = vsub.f32 %v888_v27, %v914_v36  ;;  %v989_v38 = vsub.f32 %v889_v31, %v914_v36  ;;  %v1065_v39 = vsub.f32 %v890_v28, %v914_v36  ;;  %v1141_v40 = vsub.f32 %v891_v32, %v914_v36 }
 0x147   :  { %v916_v41 = vmul.f32 1.442695, %v915_v37  ;;  %v990_v33 = vmul.f32 1.442695, %v989_v38  ;;  %v1066_v43 = vmul.f32 1.442695, %v1065_v39 }
 0x148   :  { %v1142_v44 = vmul.f32 1.442695, %v1141_v40 }
 0x149   :  { %1752 = vpow2.f32 %v916_v41 }
 0x14a   :  { %1754 = vpow2.f32 %v990_v33 }
 0x14b   :  { %1756 = vpow2.f32 %v1066_v43 }
 0x14c   :  { %1758 = vpow2.f32 %v1142_v44 }
 0x153   :  { %v1753_v45 = vpop.eup %1752 }
 0x154   :  { %v1755_v46 = vpop.eup %1754 }
 0x155   :  { %v1064_v47 = vadd.f32 %v1755_v46, %v1753_v45  ;;  %v1757_v48 = vpop.eup %1756 }
 0x156   :  { %v1759_v50 = vpop.eup %1758 }
 0x157   :  { %v1140_v49 = vadd.f32 %v1757_v48, %v1064_v47 }
 0x159   :  { %v1216_v51 = vadd.f32 %v1759_v50, %v1140_v49 }
 0x15b   :  { %1760 = vrcp.f32 %v1216_v51 }
 0x165   :  { %v1761_v42 = vpop.eup %1760 }
 0x1e4   :  { %v984_v52 = vpop.f32.mrb[4].mxu0 }
 0x1e5   :  { %v988_v53 = vmul.f32 %v1753_v45, %v984_v52  ;;  %v1359_v54 = vpop.f32.mrb[5].mxu0  ;;  %v1058_v55 = vpop.f32.mrb[4].mxu1 }
 0x1e6   :  { %v1062_v56 = vmul.f32 %v1755_v46, %v1058_v55  ;;  %v1394_v57 = vpop.f32.mrb[5].mxu1 }
 0x1e8   :  { %v1063_v58 = vadd.f32 %v1062_v56, %v988_v53 }
 0x204   :  { %v1134_v59 = vpop.f32.mrb[6].mxu0 }
 0x205   :  { %v1138_v60 = vmul.f32 %v1757_v48, %v1134_v59  ;;  %v1429_v61 = vpop.f32.mrb[7].mxu0  ;;  %v1210_v62 = vpop.f32.mrb[6].mxu1 }
 0x206   :  { %v1214_v63 = vmul.f32 %v1759_v50, %v1210_v62  ;;  %v1464_v0 = vpop.f32.mrb[7].mxu1 }
 0x207   :  { %v1139_v1 = vadd.f32 %v1138_v60, %v1063_v58 }
 0x209   :  { %v1215_v3 = vadd.f32 %v1214_v63, %v1139_v1 }
 0x20b   :  { %v1218_v5 = vmul.f32 %v1761_v42, %v1215_v3 }
 0x20d   :  { %v1226_v6 = vadd.f32 %v1256_v4, %v1218_v5 }
 0x20f   :  { %1227 = vst [vmem:[%s2576_s7] sm:$0xff] %v1226_v6 }

</bundles_post_ra>
